<compile_context>
chip_gen: v6e
topology: v6e:2x2x1
jax: 0.10.0
libtpu: 0.0.40
codegen_flags: <defaults>
</compile_context>

<pallas_src>
import functools

import jax
import jax.numpy as jnp
from jax.experimental import pallas as pl
from jax.experimental.pallas import tpu as pltpu


def _gap_kernel(x_ref, o_ref, *, inv_hw):
    # x_ref: (TN, C, H*W) VMEM tile covering TN batch elements
    # o_ref: (TN, C)
    # Widen inside the reduction (no f32 temporary of the whole tile).  The
    # cross-lane sum rides the otherwise-idle XLU slot; the 1/(H*W) constant
    # is a single VPU multiply -- all free filler under the DMA roofline.
    s = jnp.sum(x_ref[...], axis=-1, dtype=jnp.float32)
    o_ref[...] = (s * inv_hw).astype(o_ref.dtype)


def _round_up(x, m):
    return ((x + m - 1) // m) * m


def _sublane_multiple(dtype):
    # Second-minor VMEM tiling: 8 sublanes of 32-bit; sub-32-bit dtypes pack
    # along sublanes (16 rows for 2-byte, 32 rows for 1-byte).
    itemsize = jnp.dtype(dtype).itemsize
    return {4: 8, 2: 16, 1: 32}.get(itemsize, 8)


def _padded_row_bytes(c, hw, dtype):
    """VMEM bytes of one (1, C, H*W) slice after (sublane, 128) layout padding."""
    itemsize = jnp.dtype(dtype).itemsize
    return _round_up(c, _sublane_multiple(dtype)) * _round_up(hw, 128) * itemsize


def _choose_tn(n, padded_row_bytes):
    """Rows per grid step from a ~4 MiB-per-buffer (padded) VMEM budget.

    4 MiB per double-buffered input tile keeps the pipeline at the measured
    roofline knee while staying comfortably inside v5e/v6e/v7x scoped VMEM
    once padding is accounted for.  Capped at 256 rows to bound output-tile
    padding and per-step granularity; no lower artificial cap.
    """
    budget_per_buffer = 4 * 1024 * 1024
    tn = max(1, min(256, budget_per_buffer // max(padded_row_bytes, 1)))
    if tn >= n:
        return n  # block equals the full batch dim -> always layout-legal
    if tn >= 8:
        tn = (tn // 8) * 8  # sublane-dense (multiple-of-8) output blocks
    return tn


def lambda_forward(x):
    """f(x) = global average pool over spatial dims + flatten.

    x: [N, C, H, W]  ->  [N, C]
    """
    n, c, h, w = x.shape
    hw = h * w
    # Glue reshape: put the reduction axis (H*W) on the fast (lane) axis.
    x3 = x.reshape(n, c, hw)

    row_bytes = _padded_row_bytes(c, hw, x.dtype)
    tn = _choose_tn(n, row_bytes)

    # v7x megacore: make sure the "parallel" batch axis has >= 2 grid steps so
    # both TensorCores get work.  Only split when TN can stay a multiple of 8
    # (keeps the (TN, C) output block sublane-dense and layout-legal).
    if pl.cdiv(n, tn) < 2 and n >= 16:
        tn = _round_up(pl.cdiv(n, 2), 8)
    grid = (pl.cdiv(n, tn),)

    # Explicit scoped-VMEM budget: double-buffered input + double-buffered
    # output (both padded) + slack.  Keeps us safe on v5e's 16 MiB default and
    # well under v7x's 64 MiB/TC physical.
    out_itemsize = jnp.dtype(x.dtype).itemsize
    in_tile_bytes = tn * row_bytes
    out_tile_bytes = (
        _round_up(tn, _sublane_multiple(x.dtype)) * _round_up(c, 128) * out_itemsize
    )
    vmem_limit = 2 * in_tile_bytes + 2 * out_tile_bytes + 4 * 1024 * 1024

    kernel = functools.partial(_gap_kernel, inv_hw=1.0 / float(hw))

    out = pl.pallas_call(
        kernel,
        out_shape=jax.ShapeDtypeStruct((n, c), x.dtype),
        grid_spec=pltpu.PrefetchScalarGridSpec(
            num_scalar_prefetch=0,
            grid=grid,
            in_specs=[
                # Last two dims (C, H*W) cover the full array extent, so the
                # (8,128) divisibility rule is satisfied regardless of C/H*W.
                pl.BlockSpec((tn, c, hw), lambda i: (i, 0, 0)),
            ],
            out_specs=pl.BlockSpec((tn, c), lambda i: (i, 0)),
        ),
        compiler_params=pltpu.CompilerParams(
            # Batch axis is independent -> v7x shards grid steps across its
            # two TensorCores; a no-op on single-TC v5e/v6e.
            dimension_semantics=("parallel",),
            vmem_limit_bytes=int(vmem_limit),
        ),
        # Short, bandwidth-bound op: tell XLA's scheduler what it costs.
        cost_estimate=pl.CostEstimate(
            flops=n * c * hw,
            transcendentals=0,
            bytes_accessed=n * c * hw * jnp.dtype(x.dtype).itemsize
            + n * c * out_itemsize,
        ),
    )(x3)
    return out


if __name__ == "__main__":
    key = jax.random.PRNGKey(0)
    # Small shapes consistent with a WRN feature map before the head.
    N, C, H, W = 2, 4, 16, 16
    x = jax.random.normal(key, (N, C, H, W), dtype=jnp.float32)

    y = lambda_forward(x)
    y = jax.block_until_ready(y)

    # Reference check against plain JAX (same semantics as the PyTorch f).
    y_ref = jnp.mean(x.reshape(N, C, H * W), axis=-1)
    assert y.shape == (N, C), y.shape
    assert jnp.allclose(y, y_ref, atol=1e-5, rtol=1e-5), "mismatch vs reference"

    print("KERNEL_OK")
</pallas_src>

<mosaic_0001>
module attributes {stable_mosaic.version = 11 : i64} {
  func.func @_gap_kernel(%arg0: i32, %arg1: memref<2x4x256xf32, #tpu.memory_space<vmem>>, %arg2: memref<2x4xf32, #tpu.memory_space<vmem>>) attributes {dimension_semantics = [#tpu.dimension_semantics<parallel>], iteration_bounds = array<i64: 1>, scalar_prefetch = 0 : i64, scratch_operands = 0 : i64, tpu.core_type = #tpu.core_type<tc>, window_params = [{transform_indices = @transform_0, window_bounds = array<i64: 2, 4, 256>}, {transform_indices = @transform_1, window_bounds = array<i64: 2, 4>}]} {
    %c0 = arith.constant 0 : index
    %c0_0 = arith.constant 0 : index
    %c0_1 = arith.constant 0 : index
    %0 = vector.load %arg1[%c0, %c0_0, %c0_1] : memref<2x4x256xf32, #tpu.memory_space<vmem>>, vector<2x4x256xf32>
    %cst = arith.constant dense<0.000000e+00> : vector<2x4xf32>
    %1 = vector.multi_reduction <add>, %0, %cst [2] : vector<2x4x256xf32> to vector<2x4xf32>
    %cst_2 = arith.constant 3.906250e-03 : f32
    %2 = vector.broadcast %cst_2 : f32 to vector<2x4xf32>
    %3 = arith.mulf %1, %2 : vector<2x4xf32>
    %c0_3 = arith.constant 0 : index
    %c0_4 = arith.constant 0 : index
    %4 = vector.load %arg2[%c0_3, %c0_4] : memref<2x4xf32, #tpu.memory_space<vmem>>, vector<2x4xf32>
    tpu.vector_store %arg2[%c0_3, %c0_4], %3 {strides = array<i32>} : memref<2x4xf32, #tpu.memory_space<vmem>>, vector<2x4xf32>,
    return
  }
  func.func @transform_0(%arg0: i32) -> (i32, i32, i32) {
    %c0_i32 = arith.constant 0 : i32
    %c0_i32_0 = arith.constant 0 : i32
    %c0_i32_1 = arith.constant 0 : i32
    return %arg0, %c0_i32, %c0_i32_0 : i32, i32, i32
  }
  func.func @transform_1(%arg0: i32) -> (i32, i32) {
    %c0_i32 = arith.constant 0 : i32
    %c0_i32_0 = arith.constant 0 : i32
    return %arg0, %c0_i32 : i32, i32
  }
}

</mosaic_0001>

<bundles_post_ra>
// kernel: tpu_custom_call.1
= control target key start
LH: loop header
LB: loop body
LE: loop exit
PB: predicated region body
PF: predicated region fallthrough
CT: control target
= control target key end

     0   :  { %6 = vsyncpa [#allocation3], 0  ;;  %s146_s0 = inlined_call_operand.hbm [shape: f32[2,4,256], index: 0, kind: input, shape index: {}]   ;;  %s147_s1 = inlined_call_operand.hbm [shape: f32[2,4], index: 1, kind: output, shape index: {}]  }
   0x1   :  { %7 = vsyncpa [#allocation4], 0  ;;  %s126_s6 = smov [#allocation2]  }
   0x2   :  { %s13_s7 = sshll.u32 %s126_s6, 4  ;;  %s14_s7 = int_to_ptr.vmem [resolvable:$true] %s13_s7 }
   0x3   :  { %s90_s8 = scalar_lea.vmem %s14_s7, 256  ;;  %p95_p1 = scmp.lt.s32.totalorder %s14_s7, %s14_s7 }
   0x4   :  { %p91_p0 = scmp.ne.s32.totalorder %s14_s7, %s90_s8  ;;  %p96_p2 = scmp.lt.s32.totalorder %s90_s8, %s90_s8 }
   0x6   :  { %p97_p3 = por %p96_p2, %p95_p1 }
   0x8   :  { %p98_p4 = pnand %p97_p3, %p91_p0 }
   0xa   :  { %101 = shalt.err (!%p98_p4)
}
   0xb   :  { %s127_s9 = smov 128   ;;  %s128_s10 = smov 8  }
   0xc   :  { %19 = dma.hbm_to_vmem [thread:$0]  %s146_s0, 256, %s14_s7, [#allocation3], %s127_s9, %s127_s9, %s128_s10  }
   0xd   :  { %122 = dma.done.wait [#allocation3], 256  }
   0xe   :  { %123 = vsyncadd [#allocation3], 4294967040  ;;  %vm31_vm0 = vcmask 1043456   ;;  %v23_v0 = vld [vmem:[#allocation2] sm:$0xff]  ;;  %v24_v1 = vld [vmem:[#allocation2 + $0x8] sm:$0xff]  ;;  %v46_v10 = vlaneseq  ;;  %s129_s0 = smov [#allocation5]  }
   0xf   :  { %v27_v2 = vcombine.high %v23_v0, %v23_v0  ;;  %v32_v3 = vsel %vm31_vm0, %v23_v0, 0.0  ;;  %v28_v4 = vcombine.high %v24_v1, %v24_v1  ;;  %v37_v6 = vsel %vm31_vm0, %v24_v1, 0.0  ;;  %s67_s13 = sshll.u32 %s129_s0, 4  ;;  %s68_s13 = int_to_ptr.vmem [resolvable:$true] %s67_s13 }
  0x10   :  { %v47_v11 = vand.u32 127, %v46_v10  ;;  %v49_v12 = vshrl.u32 %v46_v10, 7  ;;  %vm56_vm1 = vcmask 1041409   ;;  %vm59_vm2 = vcmask 25600   ;;  %s102_s14 = scalar_lea.vmem %s68_s13, 32  ;;  %p107_p6 = scmp.lt.s32.totalorder %s68_s13, %s68_s13 }
  0x11   :  { %v33_v5 = vsel %vm31_vm0, %v27_v2, 0.0  ;;  %v38_v7 = vsel %vm31_vm0, %v28_v4, 0.0  ;;  %p103_p5 = scmp.ne.s32.totalorder %s68_s13, %s102_s14  ;;  %p108_p7 = scmp.lt.s32.totalorder %s102_s14, %s102_s14 }
  0x12   :  { %v34_v8 = vadd.f32 %v33_v5, %v32_v3  ;;  %v39_v9 = vadd.f32 %v38_v7, %v37_v6  ;;  %v50_v14 = vsub.s32 %v47_v11, %v49_v12 }
  0x13   :  { %p109_p8 = por %p108_p7, %p107_p6 }
  0x14   :  { %35 = vadd.xlane.f32.xlu0 %v34_v8 }
  0x15   :  { %p110_p9 = pnand %p109_p8, %p103_p5 }
  0x18   :  { %40 = vadd.xlane.f32.xlu0 %v39_v9 }
  0x9d   :  { %v36_v13 = vpop.xlane.xlu0 %35 }
  0x9e   :  { %v42_v15 = vmul.f32 0.00390625, %v36_v13 }
  0xa0   :  { %v51_v18 = vrot.slane %v42_v15, %v50_v14 }
  0xa1   :  { %v41_v16 = vpop.xlane.xlu0 %40 }
  0xa2   :  { %v43_v17 = vmul.f32 0.00390625, %v41_v16 }
  0xa4   :  { %v55_v19 = vrot.slane %v43_v17, %v50_v14 }
  0xa6   :  { %v57_v20 = vsel %vm56_vm1, %v55_v19, %v51_v18 }
  0xa7   :  { %60 = vst.msk [vmem:[#allocation5] sm:$0x3] %vm59_vm2, %v57_v20 }
  0xa8   :  { %113 = shalt.err (!%p110_p9)
}
  0xa9   :  { %70 = dma.vmem_to_hbm [thread:$0]  %s68_s13, 32, %s147_s1, [#allocation4]  }
  0xaa   :  { %124 = dma.done.wait [#allocation4], 32  }
  0xab   :  { %125 = vsyncadd [#allocation4], 4294967264 }
  0xac   :  { %74 = vsyncpa [#allocation3], 1 }
  0xad   :  { %75 = vsyncpa [#allocation4], 1 }

</bundles_post_ra>
